<compile_context>
chip_gen: v7x
topology: tpu7x:2x2x1
jax: 0.10.0
libtpu: 0.0.40
codegen_flags: <defaults>
</compile_context>

<pallas_src>
import jax
import jax.numpy as jnp
from jax.experimental import pallas as pl
from jax.experimental.pallas import tpu as pltpu

K = 3          # kernel_size = 2*kernel_adjust - 1, kernel_adjust = 2
PAD = K - 1    # full pad used by the transpose conv; pad=1 conv is the interior crop


def prepare_params(params):
    """One-time weight prep (hoisted out of the forward path).

    Returns (w_stacked, b_stacked):
      w_stacked: (2*C_out, K*K*C_in), rows = [highfeature (ConvTranspose2d) ; middlefeature]
                 contraction ordered (kh, kw, ci).
      b_stacked: (2*C_out, 1)
    """
    w_mid, b_mid, w_high_t, b_high = params
    # ConvTranspose2d(k, stride=1, pad=0) == cross-correlation, over an input zero-padded
    # by (k-1), with the channel-swapped spatially-flipped kernel.
    # PyTorch ConvTranspose2d weight layout: (C_in, C_out, kH, kW).
    w_hi = jnp.flip(jnp.transpose(w_high_t, (1, 0, 2, 3)), axis=(2, 3))

    def to2d(w):  # OIHW -> (C_out, kh, kw, ci) -> (C_out, K*K*C_in)
        return jnp.transpose(w, (0, 2, 3, 1)).reshape(w.shape[0], -1)

    w_stacked = jnp.concatenate([to2d(w_hi), to2d(w_mid)], axis=0)
    b_stacked = jnp.concatenate([b_high, b_mid], axis=0).reshape(-1, 1)
    return w_stacked, b_stacked


def conv_resize_forward(x, w_stacked, b_stacked):
    """Reproduces conv_resize.forward: returns (x_high, x_middle), both NCHW."""
    B, C_in, H, W = x.shape
    C_out2 = w_stacked.shape[0]          # 2 * C_out
    C_out = C_out2 // 2
    KKC = K * K * C_in
    Hh, Wh = H + (K - 1), W + (K - 1)    # full-pad ("high") output size
    Hp, Wp = H + 2 * PAD, W + 2 * PAD    # padded-image size (flat row stride = Wp)
    NCOL = pl.cdiv(Hh * Wp, 128) * 128   # lane-dense matmul N / output last dim
    XLEN = PAD * Wp + PAD + NCOL         # flat padded-image length (covers max tap slice)

    # Free row-major reshape: per-channel flattened spatial, lanes = H*W.
    x_flat = x.reshape(B, C_in, H * W)

    def kernel(x_ref, w_ref, b_ref, o_ref, xpad_ref, col_ref):
        # x_ref:    (1, C_in, H*W)
        # w_ref:    (2*C_out, K*K*C_in)
        # b_ref:    (2*C_out, 1)
        # o_ref:    (1, 2*C_out, NCOL)
        # xpad_ref: (C_in, XLEN)   flat zero-padded image, row stride Wp (VMEM scratch)
        # col_ref:  (KKC, NCOL)    shared im2col buffer (VMEM scratch)

        # Zero the (tiny, ~4-vreg) flat padded buffer every step; interior rows are
        # rewritten below, the rest stays zero (the conv padding).
        xpad_ref[...] = jnp.zeros_like(xpad_ref)

        # Stage x into the flat padded buffer, one image row at a time (static slices).
        for ih in range(H):
            dst = (PAD + ih) * Wp + PAD
            xpad_ref[:, dst:dst + W] = x_ref[0, :, ih * W:(ih + 1) * W]

        # im2col: every 3x3 tap is ONE contiguous (C_in, NCOL) lane slice of the flat
        # padded image.  col[(kh*K+kw)*C_in + ci, oh*Wp + ow] = xpad[ci, kh+oh, kw+ow]
        # for ow < Wh; columns ow in [Wh, Wp) and [Hh*Wp, NCOL) are junk -> cropped.
        for kh in range(K):
            for kw in range(K):
                r0 = (kh * K + kw) * C_in
                src = kh * Wp + kw
                col_ref[r0:r0 + C_in, :] = xpad_ref[:, src:src + NCOL]

        # One deep matmul covers BOTH convs; f32 accumulate; unmasked (x, NCOL) store.
        o_ref[0] = (
            jnp.dot(w_ref[...], col_ref[...], preferred_element_type=jnp.float32)
            + b_ref[...]).astype(o_ref.dtype)

    out = pl.pallas_call(
        kernel,
        out_shape=jax.ShapeDtypeStruct((B, C_out2, NCOL), x.dtype),
        grid_spec=pltpu.PrefetchScalarGridSpec(
            num_scalar_prefetch=0,
            grid=(B,),
            in_specs=[
                pl.BlockSpec((1, C_in, H * W), lambda b: (b, 0, 0)),
                pl.BlockSpec((C_out2, KKC), lambda b: (0, 0)),
                pl.BlockSpec((C_out2, 1), lambda b: (0, 0)),
            ],
            out_specs=pl.BlockSpec((1, C_out2, NCOL), lambda b: (b, 0, 0)),
            scratch_shapes=[
                pltpu.VMEM((C_in, XLEN), x.dtype),
                pltpu.VMEM((KKC, NCOL), x.dtype),
            ],
        ),
        compiler_params=pltpu.CompilerParams(dimension_semantics=("parallel",)),
    )(x_flat, w_stacked, b_stacked)

    # Undo the flat-row-stride trick (drop junk columns), then split & crop.
    full = out[:, :, :Hh * Wp].reshape(B, C_out2, Hh, Wp)[..., :Wh]
    x_high = full[:, :C_out]                               # (B, C_out, H+2, W+2)
    x_middle = full[:, C_out:, 1:H + 1, 1:W + 1]           # pad=1 conv == interior crop
    return x_high, x_middle


def init_params(key, in_channels, out_channels):
    """Deterministic synthetic init mirroring kaiming_normal_(fan_out, relu) + zero bias."""
    k1, k2 = jax.random.split(key)
    std_conv = (2.0 / (out_channels * K * K)) ** 0.5
    w_mid = std_conv * jax.random.normal(k1, (out_channels, in_channels, K, K), jnp.float32)
    b_mid = jnp.zeros((out_channels,), jnp.float32)
    # ConvTranspose2d weight: (in_channels, out_channels, K, K)
    std_tconv = (2.0 / (in_channels * K * K)) ** 0.5
    w_high_t = std_tconv * jax.random.normal(k2, (in_channels, out_channels, K, K), jnp.float32)
    b_high = jnp.zeros((out_channels,), jnp.float32)
    return w_mid, b_mid, w_high_t, b_high


if __name__ == "__main__":
    B, C_in, C_out, H, W = 2, 4, 8, 16, 16

    key = jax.random.PRNGKey(0)
    kx, kp = jax.random.split(key)
    x = jax.random.normal(kx, (B, C_in, H, W), jnp.float32)
    params = init_params(kp, C_in, C_out)

    # Weight prep done ONCE, outside the jitted forward (hoisted per review).
    w_stacked, b_stacked = prepare_params(params)

    fwd = jax.jit(conv_resize_forward)
    x_high, x_middle = fwd(x, w_stacked, b_stacked)
    jax.block_until_ready((x_high, x_middle))

    assert x_high.shape == (B, C_out, H + 2, W + 2), x_high.shape
    assert x_middle.shape == (B, C_out, H, W), x_middle.shape

    # pure-JAX reference (lax conv) for correctness
    w_mid, b_mid, w_high_t, b_high = params
    dn = jax.lax.conv_dimension_numbers(x.shape, w_mid.shape, ("NCHW", "OIHW", "NCHW"))
    ref_mid = jax.lax.conv_general_dilated(
        x, w_mid, (1, 1), ((1, 1), (1, 1)), dimension_numbers=dn
    ) + b_mid[None, :, None, None]
    w_eff = jnp.flip(jnp.transpose(w_high_t, (1, 0, 2, 3)), axis=(2, 3))
    ref_high = jax.lax.conv_general_dilated(
        x, w_eff, (1, 1), ((2, 2), (2, 2)), dimension_numbers=dn
    ) + b_high[None, :, None, None]

    assert jnp.allclose(x_middle, ref_mid, atol=1e-4, rtol=1e-4)
    assert jnp.allclose(x_high, ref_high, atol=1e-4, rtol=1e-4)

    print("KERNEL_OK")
</pallas_src>

<mosaic_0001>
module attributes {stable_mosaic.version = 11 : i64} {
  func.func @kernel(%arg0: i32, %arg1: memref<1x4x256xf32, #tpu.memory_space<vmem>>, %arg2: memref<16x36xf32, #tpu.memory_space<vmem>>, %arg3: memref<16x1xf32, #tpu.memory_space<vmem>>, %arg4: memref<1x16x384xf32, #tpu.memory_space<vmem>>, %arg5: memref<4x426xf32, #tpu.memory_space<vmem>>, %arg6: memref<36x384xf32, #tpu.memory_space<vmem>>) attributes {dimension_semantics = [#tpu.dimension_semantics<parallel>], iteration_bounds = array<i64: 2>, scalar_prefetch = 0 : i64, scratch_operands = 2 : i64, tpu.core_type = #tpu.core_type<tc>, window_params = [{transform_indices = @transform_0, window_bounds = array<i64: 1, 4, 256>}, {pipeline_mode = #tpu.pipeline_mode<synchronous>, transform_indices = @transform_1, window_bounds = array<i64: 16, 36>}, {pipeline_mode = #tpu.pipeline_mode<synchronous>, transform_indices = @transform_2, window_bounds = array<i64: 16, 1>}, {transform_indices = @transform_3, window_bounds = array<i64: 1, 16, 384>}]} {
    %cst = arith.constant 0.000000e+00 : f32
    %0 = vector.broadcast %cst : f32 to vector<4x426xf32>
    %c0 = arith.constant 0 : index
    %c0_0 = arith.constant 0 : index
    %1 = vector.load %arg5[%c0, %c0_0] : memref<4x426xf32, #tpu.memory_space<vmem>>, vector<4x426xf32>
    tpu.vector_store %arg5[%c0, %c0_0], %0 {strides = array<i32>} : memref<4x426xf32, #tpu.memory_space<vmem>>, vector<4x426xf32>,
    %c0_1 = arith.constant 0 : index
    %c0_2 = arith.constant 0 : index
    %c0_3 = arith.constant 0 : index
    %2 = vector.load %arg1[%c0_1, %c0_2, %c0_3] : memref<1x4x256xf32, #tpu.memory_space<vmem>>, vector<1x4x16xf32>
    %3 = vector.shape_cast %2 : vector<1x4x16xf32> to vector<4x16xf32>
    %c0_4 = arith.constant 0 : index
    %c42 = arith.constant 42 : index
    %4 = vector.load %arg5[%c0_4, %c42] : memref<4x426xf32, #tpu.memory_space<vmem>>, vector<4x16xf32>
    tpu.vector_store %arg5[%c0_4, %c42], %3 {strides = array<i32>} : memref<4x426xf32, #tpu.memory_space<vmem>>, vector<4x16xf32>,
    %c0_5 = arith.constant 0 : index
    %c0_6 = arith.constant 0 : index
    %c16 = arith.constant 16 : index
    %5 = vector.load %arg1[%c0_5, %c0_6, %c16] : memref<1x4x256xf32, #tpu.memory_space<vmem>>, vector<1x4x16xf32>
    %6 = vector.shape_cast %5 : vector<1x4x16xf32> to vector<4x16xf32>
    %c0_7 = arith.constant 0 : index
    %c62 = arith.constant 62 : index
    %7 = vector.load %arg5[%c0_7, %c62] : memref<4x426xf32, #tpu.memory_space<vmem>>, vector<4x16xf32>
    tpu.vector_store %arg5[%c0_7, %c62], %6 {strides = array<i32>} : memref<4x426xf32, #tpu.memory_space<vmem>>, vector<4x16xf32>,
    %c0_8 = arith.constant 0 : index
    %c0_9 = arith.constant 0 : index
    %c32 = arith.constant 32 : index
    %8 = vector.load %arg1[%c0_8, %c0_9, %c32] : memref<1x4x256xf32, #tpu.memory_space<vmem>>, vector<1x4x16xf32>
    %9 = vector.shape_cast %8 : vector<1x4x16xf32> to vector<4x16xf32>
    %c0_10 = arith.constant 0 : index
    %c82 = arith.constant 82 : index
    %10 = vector.load %arg5[%c0_10, %c82] : memref<4x426xf32, #tpu.memory_space<vmem>>, vector<4x16xf32>
    tpu.vector_store %arg5[%c0_10, %c82], %9 {strides = array<i32>} : memref<4x426xf32, #tpu.memory_space<vmem>>, vector<4x16xf32>,
    %c0_11 = arith.constant 0 : index
    %c0_12 = arith.constant 0 : index
    %c48 = arith.constant 48 : index
    %11 = vector.load %arg1[%c0_11, %c0_12, %c48] : memref<1x4x256xf32, #tpu.memory_space<vmem>>, vector<1x4x16xf32>
    %12 = vector.shape_cast %11 : vector<1x4x16xf32> to vector<4x16xf32>
    %c0_13 = arith.constant 0 : index
    %c102 = arith.constant 102 : index
    %13 = vector.load %arg5[%c0_13, %c102] : memref<4x426xf32, #tpu.memory_space<vmem>>, vector<4x16xf32>
    tpu.vector_store %arg5[%c0_13, %c102], %12 {strides = array<i32>} : memref<4x426xf32, #tpu.memory_space<vmem>>, vector<4x16xf32>,
    %c0_14 = arith.constant 0 : index
    %c0_15 = arith.constant 0 : index
    %c64 = arith.constant 64 : index
    %14 = vector.load %arg1[%c0_14, %c0_15, %c64] : memref<1x4x256xf32, #tpu.memory_space<vmem>>, vector<1x4x16xf32>
    %15 = vector.shape_cast %14 : vector<1x4x16xf32> to vector<4x16xf32>
    %c0_16 = arith.constant 0 : index
    %c122 = arith.constant 122 : index
    %16 = vector.load %arg5[%c0_16, %c122] : memref<4x426xf32, #tpu.memory_space<vmem>>, vector<4x16xf32>
    tpu.vector_store %arg5[%c0_16, %c122], %15 {strides = array<i32>} : memref<4x426xf32, #tpu.memory_space<vmem>>, vector<4x16xf32>,
    %c0_17 = arith.constant 0 : index
    %c0_18 = arith.constant 0 : index
    %c80 = arith.constant 80 : index
    %17 = vector.load %arg1[%c0_17, %c0_18, %c80] : memref<1x4x256xf32, #tpu.memory_space<vmem>>, vector<1x4x16xf32>
    %18 = vector.shape_cast %17 : vector<1x4x16xf32> to vector<4x16xf32>
    %c0_19 = arith.constant 0 : index
    %c142 = arith.constant 142 : index
    %19 = vector.load %arg5[%c0_19, %c142] : memref<4x426xf32, #tpu.memory_space<vmem>>, vector<4x16xf32>
    tpu.vector_store %arg5[%c0_19, %c142], %18 {strides = array<i32>} : memref<4x426xf32, #tpu.memory_space<vmem>>, vector<4x16xf32>,
    %c0_20 = arith.constant 0 : index
    %c0_21 = arith.constant 0 : index
    %c96 = arith.constant 96 : index
    %20 = vector.load %arg1[%c0_20, %c0_21, %c96] : memref<1x4x256xf32, #tpu.memory_space<vmem>>, vector<1x4x16xf32>
    %21 = vector.shape_cast %20 : vector<1x4x16xf32> to vector<4x16xf32>
    %c0_22 = arith.constant 0 : index
    %c162 = arith.constant 162 : index
    %22 = vector.load %arg5[%c0_22, %c162] : memref<4x426xf32, #tpu.memory_space<vmem>>, vector<4x16xf32>
    tpu.vector_store %arg5[%c0_22, %c162], %21 {strides = array<i32>} : memref<4x426xf32, #tpu.memory_space<vmem>>, vector<4x16xf32>,
    %c0_23 = arith.constant 0 : index
    %c0_24 = arith.constant 0 : index
    %c112 = arith.constant 112 : index
    %23 = vector.load %arg1[%c0_23, %c0_24, %c112] : memref<1x4x256xf32, #tpu.memory_space<vmem>>, vector<1x4x16xf32>
    %24 = vector.shape_cast %23 : vector<1x4x16xf32> to vector<4x16xf32>
    %c0_25 = arith.constant 0 : index
    %c182 = arith.constant 182 : index
    %25 = vector.load %arg5[%c0_25, %c182] : memref<4x426xf32, #tpu.memory_space<vmem>>, vector<4x16xf32>
    tpu.vector_store %arg5[%c0_25, %c182], %24 {strides = array<i32>} : memref<4x426xf32, #tpu.memory_space<vmem>>, vector<4x16xf32>,
    %c0_26 = arith.constant 0 : index
    %c0_27 = arith.constant 0 : index
    %c128 = arith.constant 128 : index
    %26 = vector.load %arg1[%c0_26, %c0_27, %c128] : memref<1x4x256xf32, #tpu.memory_space<vmem>>, vector<1x4x16xf32>
    %27 = vector.shape_cast %26 : vector<1x4x16xf32> to vector<4x16xf32>
    %c0_28 = arith.constant 0 : index
    %c202 = arith.constant 202 : index
    %28 = vector.load %arg5[%c0_28, %c202] : memref<4x426xf32, #tpu.memory_space<vmem>>, vector<4x16xf32>
    tpu.vector_store %arg5[%c0_28, %c202], %27 {strides = array<i32>} : memref<4x426xf32, #tpu.memory_space<vmem>>, vector<4x16xf32>,
    %c0_29 = arith.constant 0 : index
    %c0_30 = arith.constant 0 : index
    %c144 = arith.constant 144 : index
    %29 = vector.load %arg1[%c0_29, %c0_30, %c144] : memref<1x4x256xf32, #tpu.memory_space<vmem>>, vector<1x4x16xf32>
    %30 = vector.shape_cast %29 : vector<1x4x16xf32> to vector<4x16xf32>
    %c0_31 = arith.constant 0 : index
    %c222 = arith.constant 222 : index
    %31 = vector.load %arg5[%c0_31, %c222] : memref<4x426xf32, #tpu.memory_space<vmem>>, vector<4x16xf32>
    tpu.vector_store %arg5[%c0_31, %c222], %30 {strides = array<i32>} : memref<4x426xf32, #tpu.memory_space<vmem>>, vector<4x16xf32>,
    %c0_32 = arith.constant 0 : index
    %c0_33 = arith.constant 0 : index
    %c160 = arith.constant 160 : index
    %32 = vector.load %arg1[%c0_32, %c0_33, %c160] : memref<1x4x256xf32, #tpu.memory_space<vmem>>, vector<1x4x16xf32>
    %33 = vector.shape_cast %32 : vector<1x4x16xf32> to vector<4x16xf32>
    %c0_34 = arith.constant 0 : index
    %c242 = arith.constant 242 : index
    %34 = vector.load %arg5[%c0_34, %c242] : memref<4x426xf32, #tpu.memory_space<vmem>>, vector<4x16xf32>
    tpu.vector_store %arg5[%c0_34, %c242], %33 {strides = array<i32>} : memref<4x426xf32, #tpu.memory_space<vmem>>, vector<4x16xf32>,
    %c0_35 = arith.constant 0 : index
    %c0_36 = arith.constant 0 : index
    %c176 = arith.constant 176 : index
    %35 = vector.load %arg1[%c0_35, %c0_36, %c176] : memref<1x4x256xf32, #tpu.memory_space<vmem>>, vector<1x4x16xf32>
    %36 = vector.shape_cast %35 : vector<1x4x16xf32> to vector<4x16xf32>
    %c0_37 = arith.constant 0 : index
    %c262 = arith.constant 262 : index
    %37 = vector.load %arg5[%c0_37, %c262] : memref<4x426xf32, #tpu.memory_space<vmem>>, vector<4x16xf32>
    tpu.vector_store %arg5[%c0_37, %c262], %36 {strides = array<i32>} : memref<4x426xf32, #tpu.memory_space<vmem>>, vector<4x16xf32>,
    %c0_38 = arith.constant 0 : index
    %c0_39 = arith.constant 0 : index
    %c192 = arith.constant 192 : index
    %38 = vector.load %arg1[%c0_38, %c0_39, %c192] : memref<1x4x256xf32, #tpu.memory_space<vmem>>, vector<1x4x16xf32>
    %39 = vector.shape_cast %38 : vector<1x4x16xf32> to vector<4x16xf32>
    %c0_40 = arith.constant 0 : index
    %c282 = arith.constant 282 : index
    %40 = vector.load %arg5[%c0_40, %c282] : memref<4x426xf32, #tpu.memory_space<vmem>>, vector<4x16xf32>
    tpu.vector_store %arg5[%c0_40, %c282], %39 {strides = array<i32>} : memref<4x426xf32, #tpu.memory_space<vmem>>, vector<4x16xf32>,
    %c0_41 = arith.constant 0 : index
    %c0_42 = arith.constant 0 : index
    %c208 = arith.constant 208 : index
    %41 = vector.load %arg1[%c0_41, %c0_42, %c208] : memref<1x4x256xf32, #tpu.memory_space<vmem>>, vector<1x4x16xf32>
    %42 = vector.shape_cast %41 : vector<1x4x16xf32> to vector<4x16xf32>
    %c0_43 = arith.constant 0 : index
    %c302 = arith.constant 302 : index
    %43 = vector.load %arg5[%c0_43, %c302] : memref<4x426xf32, #tpu.memory_space<vmem>>, vector<4x16xf32>
    tpu.vector_store %arg5[%c0_43, %c302], %42 {strides = array<i32>} : memref<4x426xf32, #tpu.memory_space<vmem>>, vector<4x16xf32>,
    %c0_44 = arith.constant 0 : index
    %c0_45 = arith.constant 0 : index
    %c224 = arith.constant 224 : index
    %44 = vector.load %arg1[%c0_44, %c0_45, %c224] : memref<1x4x256xf32, #tpu.memory_space<vmem>>, vector<1x4x16xf32>
    %45 = vector.shape_cast %44 : vector<1x4x16xf32> to vector<4x16xf32>
    %c0_46 = arith.constant 0 : index
    %c322 = arith.constant 322 : index
    %46 = vector.load %arg5[%c0_46, %c322] : memref<4x426xf32, #tpu.memory_space<vmem>>, vector<4x16xf32>
    tpu.vector_store %arg5[%c0_46, %c322], %45 {strides = array<i32>} : memref<4x426xf32, #tpu.memory_space<vmem>>, vector<4x16xf32>,
    %c0_47 = arith.constant 0 : index
    %c0_48 = arith.constant 0 : index
    %c240 = arith.constant 240 : index
    %47 = vector.load %arg1[%c0_47, %c0_48, %c240] : memref<1x4x256xf32, #tpu.memory_space<vmem>>, vector<1x4x16xf32>
    %48 = vector.shape_cast %47 : vector<1x4x16xf32> to vector<4x16xf32>
    %c0_49 = arith.constant 0 : index
    %c342 = arith.constant 342 : index
    %49 = vector.load %arg5[%c0_49, %c342] : memref<4x426xf32, #tpu.memory_space<vmem>>, vector<4x16xf32>
    tpu.vector_store %arg5[%c0_49, %c342], %48 {strides = array<i32>} : memref<4x426xf32, #tpu.memory_space<vmem>>, vector<4x16xf32>,
    %c0_50 = arith.constant 0 : index
    %c0_51 = arith.constant 0 : index
    %50 = vector.load %arg5[%c0_50, %c0_51] : memref<4x426xf32, #tpu.memory_space<vmem>>, vector<4x384xf32>
    %c0_52 = arith.constant 0 : index
    %c0_53 = arith.constant 0 : index
    %51 = vector.load %arg6[%c0_52, %c0_53] : memref<36x384xf32, #tpu.memory_space<vmem>>, vector<4x384xf32>
    tpu.vector_store %arg6[%c0_52, %c0_53], %50 {strides = array<i32>} : memref<36x384xf32, #tpu.memory_space<vmem>>, vector<4x384xf32>,
    %c0_54 = arith.constant 0 : index
    %c1 = arith.constant 1 : index
    %52 = vector.load %arg5[%c0_54, %c1] : memref<4x426xf32, #tpu.memory_space<vmem>>, vector<4x384xf32>
    %c4 = arith.constant 4 : index
    %c0_55 = arith.constant 0 : index
    %53 = vector.load %arg6[%c4, %c0_55] : memref<36x384xf32, #tpu.memory_space<vmem>>, vector<4x384xf32>
    tpu.vector_store %arg6[%c4, %c0_55], %52 {strides = array<i32>} : memref<36x384xf32, #tpu.memory_space<vmem>>, vector<4x384xf32>,
    %c0_56 = arith.constant 0 : index
    %c2 = arith.constant 2 : index
    %54 = vector.load %arg5[%c0_56, %c2] : memref<4x426xf32, #tpu.memory_space<vmem>>, vector<4x384xf32>
    %c8 = arith.constant 8 : index
    %c0_57 = arith.constant 0 : index
    %55 = vector.load %arg6[%c8, %c0_57] : memref<36x384xf32, #tpu.memory_space<vmem>>, vector<4x384xf32>
    tpu.vector_store %arg6[%c8, %c0_57], %54 {strides = array<i32>} : memref<36x384xf32, #tpu.memory_space<vmem>>, vector<4x384xf32>,
    %c0_58 = arith.constant 0 : index
    %c20 = arith.constant 20 : index
    %56 = vector.load %arg5[%c0_58, %c20] : memref<4x426xf32, #tpu.memory_space<vmem>>, vector<4x384xf32>
    %c12 = arith.constant 12 : index
    %c0_59 = arith.constant 0 : index
    %57 = vector.load %arg6[%c12, %c0_59] : memref<36x384xf32, #tpu.memory_space<vmem>>, vector<4x384xf32>
    tpu.vector_store %arg6[%c12, %c0_59], %56 {strides = array<i32>} : memref<36x384xf32, #tpu.memory_space<vmem>>, vector<4x384xf32>,
    %c0_60 = arith.constant 0 : index
    %c21 = arith.constant 21 : index
    %58 = vector.load %arg5[%c0_60, %c21] : memref<4x426xf32, #tpu.memory_space<vmem>>, vector<4x384xf32>
    %c16_61 = arith.constant 16 : index
    %c0_62 = arith.constant 0 : index
    %59 = vector.load %arg6[%c16_61, %c0_62] : memref<36x384xf32, #tpu.memory_space<vmem>>, vector<4x384xf32>
    tpu.vector_store %arg6[%c16_61, %c0_62], %58 {strides = array<i32>} : memref<36x384xf32, #tpu.memory_space<vmem>>, vector<4x384xf32>,
    %c0_63 = arith.constant 0 : index
    %c22 = arith.constant 22 : index
    %60 = vector.load %arg5[%c0_63, %c22] : memref<4x426xf32, #tpu.memory_space<vmem>>, vector<4x384xf32>
    %c20_64 = arith.constant 20 : index
    %c0_65 = arith.constant 0 : index
    %61 = vector.load %arg6[%c20_64, %c0_65] : memref<36x384xf32, #tpu.memory_space<vmem>>, vector<4x384xf32>
    tpu.vector_store %arg6[%c20_64, %c0_65], %60 {strides = array<i32>} : memref<36x384xf32, #tpu.memory_space<vmem>>, vector<4x384xf32>,
    %c0_66 = arith.constant 0 : index
    %c40 = arith.constant 40 : index
    %62 = vector.load %arg5[%c0_66, %c40] : memref<4x426xf32, #tpu.memory_space<vmem>>, vector<4x384xf32>
    %c24 = arith.constant 24 : index
    %c0_67 = arith.constant 0 : index
    %63 = vector.load %arg6[%c24, %c0_67] : memref<36x384xf32, #tpu.memory_space<vmem>>, vector<4x384xf32>
    tpu.vector_store %arg6[%c24, %c0_67], %62 {strides = array<i32>} : memref<36x384xf32, #tpu.memory_space<vmem>>, vector<4x384xf32>,
    %c0_68 = arith.constant 0 : index
    %c41 = arith.constant 41 : index
    %64 = vector.load %arg5[%c0_68, %c41] : memref<4x426xf32, #tpu.memory_space<vmem>>, vector<4x384xf32>
    %c28 = arith.constant 28 : index
    %c0_69 = arith.constant 0 : index
    %65 = vector.load %arg6[%c28, %c0_69] : memref<36x384xf32, #tpu.memory_space<vmem>>, vector<4x384xf32>
    tpu.vector_store %arg6[%c28, %c0_69], %64 {strides = array<i32>} : memref<36x384xf32, #tpu.memory_space<vmem>>, vector<4x384xf32>,
    %c0_70 = arith.constant 0 : index
    %c42_71 = arith.constant 42 : index
    %66 = vector.load %arg5[%c0_70, %c42_71] : memref<4x426xf32, #tpu.memory_space<vmem>>, vector<4x384xf32>
    %c32_72 = arith.constant 32 : index
    %c0_73 = arith.constant 0 : index
    %67 = vector.load %arg6[%c32_72, %c0_73] : memref<36x384xf32, #tpu.memory_space<vmem>>, vector<4x384xf32>
    tpu.vector_store %arg6[%c32_72, %c0_73], %66 {strides = array<i32>} : memref<36x384xf32, #tpu.memory_space<vmem>>, vector<4x384xf32>,
    %c0_74 = arith.constant 0 : index
    %c0_75 = arith.constant 0 : index
    %68 = vector.load %arg2[%c0_74, %c0_75] : memref<16x36xf32, #tpu.memory_space<vmem>>, vector<16x36xf32>
    %c0_76 = arith.constant 0 : index
    %c0_77 = arith.constant 0 : index
    %69 = vector.load %arg6[%c0_76, %c0_77] : memref<36x384xf32, #tpu.memory_space<vmem>>, vector<36x384xf32>
    %cst_78 = arith.constant dense<0.000000e+00> : vector<16x384xf32>
    %70 = tpu.matmul %68, %69, %cst_78 {dimension_numbers = #tpu.dot_dimension_numbers<[1], [0], [0], [1], [0, 0, 1, 1], [], []>} : vector<16x36xf32>, vector<36x384xf32>, vector<16x384xf32> -> vector<16x384xf32>
    %c0_79 = arith.constant 0 : index
    %c0_80 = arith.constant 0 : index
    %71 = vector.load %arg3[%c0_79, %c0_80] : memref<16x1xf32, #tpu.memory_space<vmem>>, vector<16x1xf32>
    %72 = vector.broadcast %71 : vector<16x1xf32> to vector<16x384xf32>
    %73 = arith.addf %70, %72 : vector<16x384xf32>
    %c0_81 = arith.constant 0 : index
    %c0_82 = arith.constant 0 : index
    %c0_83 = arith.constant 0 : index
    %74 = vector.load %arg4[%c0_81, %c0_82, %c0_83] : memref<1x16x384xf32, #tpu.memory_space<vmem>>, vector<1x16x384xf32>
    %75 = vector.shape_cast %74 : vector<1x16x384xf32> to vector<16x384xf32>
    %76 = vector.shape_cast %73 : vector<16x384xf32> to vector<1x16x384xf32>
    tpu.vector_store %arg4[%c0_81, %c0_82, %c0_83], %76 {strides = array<i32>} : memref<1x16x384xf32, #tpu.memory_space<vmem>>, vector<1x16x384xf32>,
    return
  }
  func.func @transform_0(%arg0: i32) -> (i32, i32, i32) {
    %c0_i32 = arith.constant 0 : i32
    %c0_i32_0 = arith.constant 0 : i32
    %c0_i32_1 = arith.constant 0 : i32
    return %arg0, %c0_i32, %c0_i32_0 : i32, i32, i32
  }
  func.func @transform_1(%arg0: i32) -> (i32, i32) {
    %c0_i32 = arith.constant 0 : i32
    %c0_i32_0 = arith.constant 0 : i32
    %c0_i32_1 = arith.constant 0 : i32
    return %c0_i32, %c0_i32_0 : i32, i32
  }
  func.func @transform_2(%arg0: i32) -> (i32, i32) {
    %c0_i32 = arith.constant 0 : i32
    %c0_i32_0 = arith.constant 0 : i32
    %c0_i32_1 = arith.constant 0 : i32
    return %c0_i32, %c0_i32_0 : i32, i32
  }
  func.func @transform_3(%arg0: i32) -> (i32, i32, i32) {
    %c0_i32 = arith.constant 0 : i32
    %c0_i32_0 = arith.constant 0 : i32
    %c0_i32_1 = arith.constant 0 : i32
    return %arg0, %c0_i32, %c0_i32_0 : i32, i32, i32
  }
}

</mosaic_0001>

<bundles_post_ra>
// kernel: conv_resize_forward.1
= control target key start
LH: loop header
LB: loop body
LE: loop exit
PB: predicated region body
PF: predicated region fallthrough
CT: control target
= control target key end

     0   :  { %s903_s12 = smov 0   ;;  %s1013_s0 = inlined_call_operand.vmem [shape: f32[2,4,256], index: 0, kind: input, shape index: {}]   ;;  %s1014_s1 = inlined_call_operand.vmem [shape: f32[16,36], index: 1, kind: input, shape index: {}]   ;;  %s1015_s2 = inlined_call_operand.vmem [shape: f32[16,1], index: 2, kind: input, shape index: {}]   ;;  %s1016_s3 = inlined_call_operand.vmem [shape: f32[2,16,384], index: 3, kind: output, shape index: {}]  }
   0x1 LB: > { %s756_s13 = sadd.s32 4294967295, %s856_s12   ;;  %p760_p0 = scmp.ge.s32.totalorder %s856_s12, 1  ;;  %s856_s12 = sphi %s903_s12, %s13_s12  }
   0x2   : > { %p137_p1 = scmp.lt.s32.totalorder %s856_s12, 3 }
   0x4   : > { %p138_p2 = pnand %p760_p0, %p137_p1 }
   0x5   : > { %p161_p3 = scmp.lt.s32.totalorder (!%p138_p2), %s756_s13, 1  ;;  %vm172_vm0 = vcmask (!%p138_p2), 1043456   ;;  %vm173_vm1 = vcmask (!%p138_p2), 343044   ;;  %v858_v0 = vmov (!%p138_p2), 0.0   ;;  %s859_s18 = smov (!%p138_p2), 42   ;;  %vm181_vm3 = vcmask (!%p138_p2), 470352  }
   0x6   : > { %141 = sbr.rel (%p138_p2) target bundleno = 566 (0x236), region = 32  ;;  %171 = vst [vmem:[#allocation2] sm:$0xff] (!%p138_p2), %v858_v0  ;;  %vm174_vm2 = vmor (!%p138_p2), %vm173_vm1, %vm172_vm0  ;;  %607 = vmatprep.mubr.f32.mxu0 (!%p138_p2), %v858_v0  ;;  %s860_s19 = smov (!%p138_p2), 58   ;;  %vm188_vm4 = vcmask (!%p138_p2), 634352   ;;  %vm195_vm5 = vcmask (!%p138_p2), 798352   ;;  %vm212_vm6 = vcmask (!%p138_p2), 1044432  }
   0x7   : > { %175 = vst.msk [vmem:[#allocation2 + $0x8] sm:$0xff] (!%p138_p2), %vm174_vm2, %v858_v0  ;;  %s861_s20 = smov (!%p138_p2), 46   ;;  %s862_s21 = smov (!%p138_p2), 50   ;;  %vm213_vm7 = vcmask (!%p138_p2), 80900   ;;  %vm209_vm8 = vcmask (!%p138_p2), 474112   ;;  %vm202_vm9 = vcmask (!%p138_p2), 962352  }
   0x8   : > { %s863_s22 = smov (!%p138_p2), 54   ;;  %s864_s23 = smov (!%p138_p2), 62   ;;  %vm214_vm10 = vmor (!%p138_p2), %vm213_vm7, %vm212_vm6  ;;  %vm221_vm11 = vcmask (!%p138_p2), 240752   ;;  %vm228_vm12 = vcmask (!%p138_p2), 404752   ;;  %vm235_vm13 = vcmask (!%p138_p2), 568752   ;;  %vm242_vm14 = vcmask (!%p138_p2), 732752  }
   0x9   : > { %s865_s24 = smov (!%p138_p2), 66   ;;  %s866_s25 = smov (!%p138_p2), 70   ;;  %vm259_vm15 = vcmask (!%p138_p2), 1044368   ;;  %vm260_vm1 = vcmask (!%p138_p2), 15364   ;;  %vm256_vm2 = vcmask (!%p138_p2), 670720   ;;  %vm275_vm6 = vcmask (!%p138_p2), 339152  }
   0xa   : > { %s867_s26 = smov (!%p138_p2), 82   ;;  %s868_s27 = smov (!%p138_p2), 74   ;;  %vm282_vm7 = vcmask (!%p138_p2), 503152   ;;  %v957_v44 = vld [vmem:[%s1014_s1] sm:$0xff] (!%p138_p2)  ;;  %v516_v46 = vld [vmem:[%s1015_s2 + $0x8] sm:$0xff] (!%p138_p2)  ;;  %v882_v47 = vmov (!%p138_p2), 0  }
   0xb   : > { %s869_s28 = smov (!%p138_p2), 78   ;;  %s870_s29 = smov (!%p138_p2), 86   ;;  %v515_v45 = vld [vmem:[%s1015_s2] sm:$0xff] (!%p138_p2)  ;;  %844 = vset.pattern.permute.xlu0 (!%p138_p2), %v882_v47  ;;  %845 = vset.pattern.permute.xlu1 (!%p138_p2), %v882_v47 }
   0xc   : > { %s871_s30 = smov (!%p138_p2), 90   ;;  %s872_s4 = smov (!%p138_p2), 94  }
   0xd   : > { %s1018_s13 = smov (!%p161_p3, %s756_s13), 1  ;;  %s873_s5 = smov 98  }
   0xe   : > { %s773_s14 = sshll.u32 %s1018_s13, 3  ;;  %s874_s6 = smov 102  }
   0xf   : > { %s921_s17 = scalar_lea.vmem %s1013_s0, %s773_s14  ;;  %s875_s7 = smov 126  }
  0x10   : > { %v176_v1 = vld [vmem:[%s921_s17] sm:$0xf]  ;;  %v251_v9 = vld [vmem:[%s921_s17 + $0x4] sm:$0xf]  ;;  %s876_s8 = smov 127   ;;  %s877_s9 = smov 106  }
  0x11   : > { %v204_v2 = vld [vmem:[%s921_s17] sm:$0xf]  ;;  %178 = vrot.lane.b32.xlu0 %v176_v1, %s859_s18  ;;  %v237_v10 = vld [vmem:[%s921_s17 + $0x4] sm:$0xf]  ;;  %s878_s10 = smov 108   ;;  %s879_s11 = smov 87  }
  0x12   : > { %206 = vrot.lane.b32.xlu1 %v204_v2, %s860_s19  ;;  %v183_v3 = vld [vmem:[%s921_s17] sm:$0xf]  ;;  %v244_v11 = vld [vmem:[%s921_s17 + $0x4] sm:$0xf]  ;;  %s880_s14 = smov 107   ;;  %s881_s15 = smov 88  }
  0x13   : > { %v190_v4 = vld [vmem:[%s921_s17] sm:$0xf]  ;;  %v263_v12 = vld [vmem:[%s921_s17 + $0x4] sm:$0xf] }
  0x14   : > { %v197_v5 = vld [vmem:[%s921_s17] sm:$0xf]  ;;  %v270_v13 = vld [vmem:[%s921_s17 + $0x4] sm:$0xf] }
  0x15   : > { %185 = vrot.lane.b32.xlu0 %v183_v3, %s861_s20  ;;  %v216_v6 = vld [vmem:[%s921_s17] sm:$0xf]  ;;  %v277_v14 = vld [vmem:[%s921_s17 + $0x4] sm:$0xf] }
  0x16   : > { %192 = vrot.lane.b32.xlu1 %v190_v4, %s862_s21  ;;  %v223_v7 = vld [vmem:[%s921_s17] sm:$0xf]  ;;  %v284_v15 = vld [vmem:[%s921_s17 + $0x4] sm:$0xf] }
  0x17   : > { %v230_v8 = vld [vmem:[%s921_s17] sm:$0xf]  ;;  %v291_v16 = vld [vmem:[%s921_s17 + $0x4] sm:$0xf] }
  0x19   : > { %199 = vrot.lane.b32.xlu0 %v197_v5, %s863_s22 }
  0x1a   : > { %218 = vrot.lane.b32.xlu1 %v216_v6, %s864_s23 }
  0x1d   : > { %225 = vrot.lane.b32.xlu0 %v223_v7, %s865_s24  ;;  %s810_s24 = smul.u32 48, %s1018_s13 }
  0x1e   : > { %232 = vrot.lane.b32.xlu1 %v230_v8, %s866_s25 }
  0x21   : > { %253 = vrot.lane.b32.xlu0 %v251_v9, %s867_s26 }
  0x22   : > { %239 = vrot.lane.b32.xlu1 %v237_v10, %s868_s27  ;;  %s170_s27 = scalar_lea.vmem %s1016_s3, %s810_s24 }
  0x25   : > { %246 = vrot.lane.b32.xlu0 %v244_v11, %s869_s28 }
  0x26   : > { %265 = vrot.lane.b32.xlu1 %v263_v12, %s870_s29 }
  0x29   : > { %272 = vrot.lane.b32.xlu0 %v270_v13, %s871_s30 }
  0x2a   : > { %279 = vrot.lane.b32.xlu1 %v277_v14, %s872_s4 }
  0x2d   : > { %286 = vrot.lane.b32.xlu0 %v284_v15, %s873_s5 }
  0x2e   : > { %293 = vrot.lane.b32.xlu1 %v291_v16, %s874_s6 }
  0x83   : > { %v179_v17 = vpop.permute.xlu0 %178 }
  0x84   : > { %v207_v18 = vpop.permute.xlu1 %206  ;;  %182 = vst.msk [vmem:[#allocation2] sm:$0xf] %vm181_vm3, %v179_v17  ;;  %vm249_vm3 = vcmask 896752  }
  0x85   : > { %v208_v21 = vrot.slane %v207_v18, 4 }
  0x87   : > { %v186_v19 = vpop.permute.xlu0 %185  ;;  %v210_v24 = vsel %vm209_vm8, %v208_v21, %v207_v18  ;;  %vm289_vm8 = vcmask 667152  }
  0x88   : > { %v193_v20 = vpop.permute.xlu1 %192  ;;  %189 = vst.msk [vmem:[#allocation2] sm:$0xf] %vm188_vm4, %v186_v19  ;;  %vm261_vm4 = vmor %vm260_vm1, %vm259_vm15  ;;  %vm368_vm15 = vcmask 883712   ;;  %vm392_vm1 = vcmask 875520  }
  0x89   : > { %196 = vst.msk [vmem:[#allocation2] sm:$0xf] %vm195_vm5, %v193_v20  ;;  %vm268_vm5 = vcmask 175152  }
  0x8b   : > { %v200_v22 = vpop.permute.xlu0 %199 }
  0x8c   : > { %v219_v23 = vpop.permute.xlu1 %218  ;;  %203 = vst.msk [vmem:[#allocation2] sm:$0xf] %vm202_vm9, %v200_v22  ;;  %vm296_vm9 = vcmask 831152  }
  0x8d   : > { %215 = vst.msk [vmem:[#allocation2] sm:$0xff] %vm214_vm10, %v210_v24  ;;  %vm527_vm10 = vcmask 293888  }
  0x8e   : > { %222 = vst.msk [vmem:[#allocation2 + $0x4] sm:$0xf] %vm221_vm11, %v219_v23  ;;  %791 = vmatprep.mubr.msk.f32.mxu1 %vm527_vm10, %v957_v44  ;;  %vm416_vm11 = vcmask 867328  }
  0x8f   : > { %v226_v25 = vpop.permute.xlu0 %225 }
  0x90   : > { %v233_v26 = vpop.permute.xlu1 %232  ;;  %229 = vst.msk [vmem:[#allocation2 + $0x4] sm:$0xf] %vm228_vm12, %v226_v25  ;;  %vm464_vm12 = vcmask 711680  }
  0x91   : > { %236 = vst.msk [vmem:[#allocation2 + $0x4] sm:$0xf] %vm235_vm13, %v233_v26  ;;  %vm344_vm13 = vcmask 1031168  }
  0x93   : > { %v254_v27 = vpop.permute.xlu0 %253 }
  0x94   : > { %v240_v28 = vpop.permute.xlu1 %239  ;;  %v255_v29 = vrot.slane %v254_v27, 4 }
  0x95   : > { %243 = vst.msk [vmem:[#allocation2 + $0x4] sm:$0xf] %vm242_vm14, %v240_v28  ;;  %vm320_vm14 = vcmask 1039360  }
  0x96   : > { %v257_v32 = vsel %vm256_vm2, %v255_v29, %v254_v27  ;;  %vm440_vm2 = vcmask 719872  }
  0x97   : > { %v247_v30 = vpop.permute.xlu0 %246 }
  0x98   : > { %v266_v31 = vpop.permute.xlu1 %265  ;;  %250 = vst.msk [vmem:[#allocation2 + $0x4] sm:$0xf] %vm249_vm3, %v247_v30  ;;  %vm488_vm3 = vcmask 703488  }
  0x99   : > { %262 = vst.msk [vmem:[#allocation2 + $0x4] sm:$0xff] %vm261_vm4, %v257_v32 }
  0x9a   : > { %269 = vst.msk [vmem:[#allocation2 + $0x8] sm:$0xf] %vm268_vm5, %v266_v31 }
  0x9b   : > { %v273_v33 = vpop.permute.xlu0 %272 }
  0x9c   : > { %v280_v34 = vpop.permute.xlu1 %279  ;;  %276 = vst.msk [vmem:[#allocation2 + $0x8] sm:$0xf] %vm275_vm6, %v273_v33 }
  0x9d   : > { %283 = vst.msk [vmem:[#allocation2 + $0x8] sm:$0xf] %vm282_vm7, %v280_v34 }
  0x9f   : > { %v287_v35 = vpop.permute.xlu0 %286 }
  0xa0   : > { %v294_v36 = vpop.permute.xlu1 %293  ;;  %v330_v37 = vld [vmem:[#allocation2] sm:$0xff]  ;;  %290 = vst.msk [vmem:[#allocation2 + $0x8] sm:$0xf] %vm289_vm8, %v287_v35 }
  0xa1   : > { %336 = vrot.lane.b32.xlu1 %v330_v37, %s875_s7  ;;  %v334_v38 = vcombine.high %v330_v37, %v330_v37  ;;  %314 = vrot.lane.b32.xlu0 %v330_v37, %s876_s8  ;;  %297 = vst.msk [vmem:[#allocation2 + $0x8] sm:$0xf] %vm296_vm9, %v294_v36  ;;  %303 = vst [vmem:[#allocation3] sm:$0xf] %v330_v37  ;;  %v310_v39 = vcombine.low %v330_v37, %v330_v37 }
  0xa3   : > { %304 = vst [vmem:[#allocation3 + $0x8] sm:$0xf] %v334_v38 }
  0xa5   : > { %408 = vrot.lane.b32.xlu1 %v310_v39, %s877_s9  ;;  %362 = vrot.lane.b32.xlu0 %v330_v37, %s878_s10 }
  0xa8   : > { %v299_v40 = vld [vmem:[#allocation2 + $0x8] sm:$0xf] }
  0xa9   : > { %305 = vst [vmem:[#allocation3 + $0x10] sm:$0xf] %v299_v40  ;;  %456 = vrot.lane.b32.xlu1 %v310_v39, %s879_s11  ;;  %410 = vrot.lane.b32.xlu0 %v330_v37, %s877_s9  ;;  %v331_v41 = vld [vmem:[#allocation2 + $0x8] sm:$0xff] }
  0xaa   : > { %v311_v42 = vcombine.low %v331_v41, %v331_v41  ;;  %v335_v43 = vcombine.high %v331_v41, %v331_v41 }
  0xad   : > { %458 = vrot.lane.b32.xlu0 %v330_v37, %s879_s11  ;;  %340 = vrot.lane.b32.xlu1 %v331_v41, %s875_s7 }
  0xb1   : > { %384 = vrot.lane.b32.xlu0 %v330_v37, %s880_s14  ;;  %318 = vrot.lane.b32.xlu1 %v331_v41, %s876_s8 }
  0xb5   : > { %432 = vrot.lane.b32.xlu0 %v330_v37, %s881_s15  ;;  %366 = vrot.lane.b32.xlu1 %v331_v41, %s878_s10 }
  0xb9   : > { %338 = vrot.lane.b32.xlu0 %v334_v38, %s875_s7  ;;  %388 = vrot.lane.b32.xlu1 %v331_v41, %s880_s14 }
  0xbd   : > { %312 = vrot.lane.b32.xlu0 %v310_v39, %s876_s8  ;;  %436 = vrot.lane.b32.xlu1 %v331_v41, %s881_s15 }
  0xc1   : > { %360 = vrot.lane.b32.xlu0 %v310_v39, %s878_s10  ;;  %414 = vrot.lane.b32.xlu1 %v331_v41, %s877_s9 }
  0xc5   : > { %386 = vrot.lane.b32.xlu0 %v334_v38, %s880_s14  ;;  %316 = vrot.lane.b32.xlu1 %v311_v42, %s876_s8 }
  0xc9   : > { %434 = vrot.lane.b32.xlu0 %v334_v38, %s881_s15  ;;  %364 = vrot.lane.b32.xlu1 %v311_v42, %s878_s10 }
  0xcd   : > { %342 = vrot.lane.b32.xlu0 %v335_v43, %s875_s7  ;;  %412 = vrot.lane.b32.xlu1 %v311_v42, %s877_s9 }
  0xd1   : > { %482 = vrot.lane.b32.xlu0 %v334_v38, %s870_s29  ;;  %460 = vrot.lane.b32.xlu1 %v311_v42, %s879_s11 }
  0xd5   : > { %390 = vrot.lane.b32.xlu0 %v335_v43, %s880_s14  ;;  %462 = vrot.lane.b32.xlu1 %v331_v41, %s879_s11 }
  0xd9   : > { %438 = vrot.lane.b32.xlu0 %v335_v43, %s881_s15  ;;  %484 = vrot.lane.b32.xlu1 %v331_v41, %s870_s29 }
  0xdd   : > { %480 = vrot.lane.b32.xlu0 %v330_v37, %s870_s29  ;;  %486 = vrot.lane.b32.xlu1 %v335_v43, %s870_s29 }
  0xe1   : > { %519 = vperm.xlu0 %844, %v515_v45   ;;  %524 = vperm.xlu1 %845, %v516_v46  }
 0x113   : > { %v337_v48 = vpop.permute.xlu1 %336  ;;  %v315_v49 = vpop.permute.xlu0 %314 }
 0x117   : > { %v409_v50 = vpop.permute.xlu1 %408  ;;  %v363_v51 = vpop.permute.xlu0 %362 }
 0x11b   : > { %v457_v52 = vpop.permute.xlu1 %456  ;;  %v411_v53 = vpop.permute.xlu0 %410 }
 0x11c   : > { %v417_v54 = vsel %vm416_vm11, %v409_v50, %v411_v53 }
 0x11d   : > { %423 = vst [vmem:[#allocation3 + $0x30] sm:$0xf0] %v417_v54 }
 0x11f   : > { %v341_v55 = vpop.permute.xlu1 %340  ;;  %v459_v56 = vpop.permute.xlu0 %458 }
 0x120   : > { %v465_v57 = vsel %vm464_vm12, %v457_v52, %v459_v56 }
 0x121   : > { %471 = vst [vmem:[#allocation3 + $0x48] sm:$0xf0] %v465_v57 }
 0x123   : > { %v319_v58 = vpop.permute.xlu1 %318  ;;  %v385_v59 = vpop.permute.xlu0 %384 }
 0x127   : > { %v367_v60 = vpop.permute.xlu1 %366  ;;  %v433_v61 = vpop.permute.xlu0 %432 }
 0x12b   : > { %v389_v62 = vpop.permute.xlu1 %388  ;;  %v339_v63 = vpop.permute.xlu0 %338 }
 0x12c   : > { %v345_v1 = vsel %vm344_vm13, %v337_v48, %v339_v63  ;;  %v346_v2 = vsel %vm344_vm13, %v339_v63, %v341_v55  ;;  %v499_v63 = vld [vmem:[%s1014_s1 + $0x8] sm:$0xff] }
 0x12d   : > { %351 = vst [vmem:[#allocation3 + $0x18] sm:$0xf] %v345_v1  ;;  %352 = vst [vmem:[#allocation3 + $0x20] sm:$0xf] %v346_v2 }
 0x12f   : > { %v973_v3 = vpop.permute.xlu1 %436  ;;  %v313_v4 = vpop.permute.xlu0 %312 }
 0x130   : > { %v321_v5 = vsel %vm320_vm14, %v313_v4, %v315_v49 }
 0x131   : > { %327 = vst [vmem:[#allocation3] sm:$0xf0] %v321_v5 }
 0x133   : > { %v415_v6 = vpop.permute.xlu1 %414  ;;  %v361_v7 = vpop.permute.xlu0 %360 }
 0x134   : > { %v369_v8 = vsel %vm368_vm15, %v361_v7, %v363_v51 }
 0x135   : > { %375 = vst [vmem:[#allocation3 + $0x18] sm:$0xf0] %v369_v8 }
 0x137   : > { %v317_v9 = vpop.permute.xlu1 %316  ;;  %v387_v10 = vpop.permute.xlu0 %386 }
 0x138   : > { %v322_v11 = vsel %vm320_vm14, %v315_v49, %v317_v9  ;;  %v323_v12 = vsel %vm320_vm14, %v317_v9, %v319_v58  ;;  %v393_v13 = vsel %vm392_vm1, %v385_v59, %v387_v10  ;;  %v394_v14 = vsel %vm392_vm1, %v387_v10, %v389_v62  ;;  %v500_v33 = vld [vmem:[#allocation3] sm:$0xff] }
 0x139   : > { %328 = vst [vmem:[#allocation3 + $0x8] sm:$0xf0] %v322_v11  ;;  %329 = vst [vmem:[#allocation3 + $0x10] sm:$0xf0] %v323_v12 }
 0x13a   : > { %399 = vst [vmem:[#allocation3 + $0x30] sm:$0xf] %v393_v13  ;;  %400 = vst [vmem:[#allocation3 + $0x38] sm:$0xf] %v394_v14 }
 0x13b   : > { %v365_v15 = vpop.permute.xlu1 %364  ;;  %v435_v16 = vpop.permute.xlu0 %434 }
 0x13c   : > { %v370_v17 = vsel %vm368_vm15, %v363_v51, %v365_v15  ;;  %v371_v18 = vsel %vm368_vm15, %v365_v15, %v367_v60  ;;  %v441_v19 = vsel %vm440_vm2, %v433_v61, %v435_v16  ;;  %v442_v20 = vsel %vm440_vm2, %v435_v16, %v973_v3  ;;  %v503_v28 = vld [vmem:[#allocation3 + $0x18] sm:$0xff] }
 0x13d   : > { %376 = vst [vmem:[#allocation3 + $0x20] sm:$0xf0] %v370_v17  ;;  %377 = vst [vmem:[#allocation3 + $0x28] sm:$0xf0] %v371_v18  ;;  %v796_v34 = vpack.c.bf16 %v503_v28, %v500_v33 }
 0x13e   : > { %447 = vst [vmem:[#allocation3 + $0x48] sm:$0xf] %v441_v19  ;;  %448 = vst [vmem:[#allocation3 + $0x50] sm:$0xf] %v442_v20 }
 0x13f   : > { %v413_v21 = vpop.permute.xlu1 %412  ;;  %v343_v22 = vpop.permute.xlu0 %342 }
 0x140   : > { %v418_v23 = vsel %vm416_vm11, %v411_v53, %v413_v21  ;;  %v419_v24 = vsel %vm416_vm11, %v413_v21, %v415_v6  ;;  %v347_v25 = vsel %vm344_vm13, %v341_v55, %v343_v22  ;;  %v501_v30 = vld [vmem:[#allocation3 + $0x8] sm:$0xff]  ;;  %v502_v39 = vld [vmem:[#allocation3 + $0x10] sm:$0xff] }
 0x141   : > { %424 = vst [vmem:[#allocation3 + $0x38] sm:$0xf0] %v418_v23  ;;  %425 = vst [vmem:[#allocation3 + $0x40] sm:$0xf0] %v419_v24  ;;  %v506_v51 = vld [vmem:[#allocation3 + $0x30] sm:$0xff] }
 0x142   : > { %353 = vst [vmem:[#allocation3 + $0x28] sm:$0xf] %v347_v25 }
 0x143   : > { %v461_v26 = vpop.permute.xlu1 %460  ;;  %v483_v27 = vpop.permute.xlu0 %482 }
 0x144   : > { %v466_v29 = vsel %vm464_vm12, %v459_v56, %v461_v26  ;;  %v504_v31 = vld [vmem:[#allocation3 + $0x20] sm:$0xff] }
 0x145   : > { %472 = vst [vmem:[#allocation3 + $0x50] sm:$0xf0] %v466_v29  ;;  %v794_v32 = vpack.c.bf16 %v504_v31, %v501_v30  ;;  %v509_v45 = vld [vmem:[#allocation3 + $0x48] sm:$0xff] }
 0x146   : > { %v800_v52 = vpack.c.bf16 %v509_v45, %v506_v51 }
 0x147   : > { %v463_v35 = vpop.permute.xlu1 %462  ;;  %795 = vmatprep.subr.bf16.mxu0 %v794_v32  ;;  %v391_v36 = vpop.permute.xlu0 %390 }
 0x148   : > { %v467_v37 = vsel %vm464_vm12, %v461_v26, %v463_v35  ;;  %v395_v38 = vsel %vm392_vm1, %v389_v62, %v391_v36  ;;  %797 = vmatpush1.bf16.msra.mxu0 %v796_v34  ;;  %v507_v48 = vld [vmem:[#allocation3 + $0x38] sm:$0xff] }
 0x149   : > { %v505_v40 = vld [vmem:[#allocation3 + $0x28] sm:$0xff]  ;;  %473 = vst [vmem:[#allocation3 + $0x58] sm:$0xf0] %v467_v37  ;;  %401 = vst [vmem:[#allocation3 + $0x40] sm:$0xf] %v395_v38 }
 0x14a   : > { %v802_v41 = vpack.c.bf16 %v505_v40, %v502_v39 }
 0x14b   : > { %v485_v42 = vpop.permute.xlu1 %484  ;;  %v439_v43 = vpop.permute.xlu0 %438 }
 0x14c   : > { %803 = vmatprep.subr.bf16.mxu1 %v802_v41  ;;  %v490_v46 = vsel %vm488_vm3, %v483_v27, %v485_v42  ;;  %v443_v47 = vsel %vm440_vm2, %v973_v3, %v439_v43  ;;  %v510_v49 = vld [vmem:[#allocation3 + $0x50] sm:$0xff] }
 0x14d   : > { %805 = vmatpush3.bf16.msra.mxu1 %v802_v41  ;;  %496 = vst [vmem:[#allocation3 + $0x68] sm:$0xf] %v490_v46  ;;  %449 = vst [vmem:[#allocation3 + $0x58] sm:$0xf] %v443_v47  ;;  %v798_v50 = vpack.c.bf16 %v510_v49, %v507_v48 }
 0x14f   : > { %v487_v53 = vpop.permute.xlu1 %486  ;;  %799 = vmatprep.subr.bf16.mxu0 %v798_v50  ;;  %v481_v54 = vpop.permute.xlu0 %480 }
 0x150   : > { %v491_v55 = vsel %vm488_vm3, %v485_v42, %v487_v53  ;;  %v489_v56 = vsel %vm488_vm3, %v481_v54, %v483_v27  ;;  %801 = vmatpush1.bf16.msra.mxu0 %v800_v52  ;;  %v508_v58 = vld [vmem:[#allocation3 + $0x40] sm:$0xff] }
 0x151   : > { %497 = vst [vmem:[#allocation3 + $0x70] sm:$0xf] %v491_v55  ;;  %495 = vst [vmem:[#allocation3 + $0x60] sm:$0xf] %v489_v56 }
 0x154   : > { %v513_v57 = vld [vmem:[#allocation3 + $0x68] sm:$0xf]  ;;  %v511_v59 = vld [vmem:[#allocation3 + $0x58] sm:$0xff] }
 0x155   : > { %764 = vmatprep.subr.msk.mxu0 %vm172_vm0, %v513_v57  ;;  %v806_v60 = vpack.c.bf16 %v511_v59, %v508_v58 }
 0x157   : > { %807 = vmatprep.subr.bf16.mxu1 %v806_v60 }
 0x158   : > { %809 = vmatpush3.bf16.msra.mxu1 %v806_v60  ;;  %v512_v61 = vld [vmem:[#allocation3 + $0x60] sm:$0xf]  ;;  %v514_v62 = vld [vmem:[#allocation3 + $0x70] sm:$0xf] }
 0x159   : > { %765 = vmatpush1.msk.msra.mxu0 %vm172_vm0, %v512_v61  ;;  %789 = vmatprep.subr.msk.mxu1 %vm172_vm0, %v514_v62 }
 0x15a   : > { %766 = vmatmul.mubr.msk.f32.vlgmr.msra.gmra.mrb[0].mxu0 %vm527_vm10, %v957_v44 }
 0x15b   : > { %613 = vmatprep.mubr.f32.mxu0 %v858_v0 }
 0x15c   : > { %790 = vmatpush3.msk.msra.mxu1 %vm172_vm0, %v514_v62 }
 0x15d   : > { %792 = vmatmul.mubr.msk.f32.vlgmr.msra.gmra.mrb[0].mxu1 %vm527_vm10, %v499_v63 }
 0x15e   : > { %767 = vmatmul.mubr.msk.f32.gmra.mrb[2].mxu0 %vm527_vm10, %v499_v63 }
 0x160   : > { %v520_v1 = vpop.permute.xlu0 %519  ;;  %v525_v4 = vpop.permute.xlu1 %524 }
 0x22d   : > { %v609_v2 = vpop.f32.mrb[0].mxu0 }
 0x22e   : > { %v610_v44 = vadd.f32 %v609_v2, %v520_v1  ;;  %v611_v3 = vpop.f32.mrb[1].mxu0 }
 0x22f   : > { %v612_v5 = vadd.f32 %v611_v3, %v520_v1 }
 0x230   : > { %695 = vst [vmem:[%s170_s27] sm:$0xff] %v610_v44  ;;  %v793_v6 = vpop.f32.mrb[0].mxu1 }
 0x231   : > { %696 = vst [vmem:[%s170_s27 + $0x8] sm:$0xff] %v612_v5  ;;  %v692_v0 = vadd.f32 %v793_v6, %v525_v4  ;;  %v615_v7 = vpop.f32.mrb[2].mxu0  ;;  %v686_v8 = vpop.f32.mrb[1].mxu1 }
 0x232   : > { %v616_v9 = vadd.f32 %v615_v7, %v525_v4  ;;  %v687_v10 = vadd.f32 %v686_v8, %v520_v1  ;;  %v617_v11 = vpop.f32.mrb[3].mxu0 }
 0x233   : > { %700 = vst [vmem:[%s170_s27 + $0x28] sm:$0xff] %v692_v0  ;;  %v618_v12 = vadd.f32 %v617_v11, %v525_v4 }
 0x234   : > { %698 = vst [vmem:[%s170_s27 + $0x18] sm:$0xff] %v616_v9  ;;  %697 = vst [vmem:[%s170_s27 + $0x10] sm:$0xff] %v687_v10 }
 0x235   : > { %699 = vst [vmem:[%s170_s27 + $0x20] sm:$0xff] %v618_v12 }
 0x236 PF: > { %s13_s12 = sadd.s32 1, %s856_s12  }
 0x237   : > { %p10_p4 = scmp.ge.s32.totalorder %s13_s12, 4  }
 0x239   :  { %12 = sbr.rel (!%p10_p4) target bundleno = 1 (0x1), region = 62 }

</bundles_post_ra>
